<compile_context>
chip_gen: v6e
topology: v6e:2x2x1
jax: 0.10.0
libtpu: 0.0.40
codegen_flags: <defaults>
</compile_context>

<pallas_src>
import math
import functools

import jax
import jax.numpy as jnp
from jax import lax
from jax.experimental import pallas as pl
from jax.experimental.pallas import tpu as pltpu


def llama_attention_kernel(x_ref, wqkv_ref, wo_ref,
                           out_ref, attnw_ref, *, head_dim):
    # x_ref:    (1, S, H)        bf16
    # wqkv_ref: (1, H, 3*hd)     bf16   (per-head fused [Wq|Wk|Wv], (in, out))
    # wo_ref:   (1, hd, H)       bf16   (per-head slice of Wo, (in, out))
    # out_ref:  (1, S, H)        f32    (accumulated over the head grid axis)
    # attnw_ref:(1, 1, S, S)     f32
    h = pl.program_id(1)

    x = x_ref[0]          # (S, H)   bf16
    wqkv = wqkv_ref[0]    # (H, 3hd) bf16
    wo = wo_ref[0]        # (hd, H)  bf16

    # Fused Q/K/V projection for this head (one MXU op, bf16 in, f32 acc).
    qkv = jnp.dot(x, wqkv, preferred_element_type=jnp.float32)   # (S, 3hd) f32

    scale = 1.0 / math.sqrt(head_dim)
    q = (qkv[:, :head_dim] * scale).astype(jnp.bfloat16)          # (S, hd)
    k = qkv[:, head_dim:2 * head_dim].astype(jnp.bfloat16)        # (S, hd)
    v = qkv[:, 2 * head_dim:].astype(jnp.bfloat16)                # (S, hd)

    # scores = q @ k^T without materializing a transpose: contract last dims.
    scores = lax.dot_general(
        q, k, dimension_numbers=(((1,), (1,)), ((), ())),
        preferred_element_type=jnp.float32)                       # (S, S) f32

    # Max-stabilized softmax, f32 math; divide pushed to the EUP.
    m = jnp.max(scores, axis=-1, keepdims=True)
    e = jnp.exp(scores - m)
    denom = jnp.sum(e, axis=-1, keepdims=True)
    w = e * pl.reciprocal(denom, approx=True)                     # (S, S) f32

    attnw_ref[0, 0] = w

    # Context and this head's contribution to the output projection.
    ctx = jnp.dot(w.astype(jnp.bfloat16), v,
                  preferred_element_type=jnp.float32)             # (S, hd) f32
    partial = jnp.dot(ctx.astype(jnp.bfloat16), wo,
                      preferred_element_type=jnp.float32)         # (S, H) f32

    # Accumulate across heads directly in the resident f32 output block.
    @pl.when(h == 0)
    def _():
        out_ref[...] = jnp.zeros_like(out_ref)

    out_ref[0] += partial


def llama_attention(hidden_states, wq, wk, wv, wo, *, num_heads):
    """hidden_states: (B, S, H) f32; wq/wk/wv/wo: (H, H) pre-transposed (in, out)."""
    B, S, H = hidden_states.shape
    hd = H // num_heads

    # Per-head, MXU-ready weight layout, cast to bf16 (half the weight DMA).
    wq_h = wq.reshape(H, num_heads, hd).transpose(1, 0, 2)        # (nh, H, hd)
    wk_h = wk.reshape(H, num_heads, hd).transpose(1, 0, 2)
    wv_h = wv.reshape(H, num_heads, hd).transpose(1, 0, 2)
    wqkv = jnp.concatenate([wq_h, wk_h, wv_h], axis=-1).astype(jnp.bfloat16)  # (nh, H, 3hd)
    wo_h = wo.reshape(num_heads, hd, H).astype(jnp.bfloat16)                  # (nh, hd, H)

    x = hidden_states.astype(jnp.bfloat16)

    kernel = functools.partial(llama_attention_kernel, head_dim=hd)

    out_shape = (
        jax.ShapeDtypeStruct((B, S, H), jnp.float32),
        jax.ShapeDtypeStruct((B, num_heads, S, S), jnp.float32),
    )

    return pl.pallas_call(
        kernel,
        out_shape=out_shape,
        grid_spec=pltpu.PrefetchScalarGridSpec(
            num_scalar_prefetch=0,
            grid=(B, num_heads),
            in_specs=[
                pl.BlockSpec((1, S, H), lambda b, h: (b, 0, 0)),        # x (DMA once per batch elem)
                pl.BlockSpec((1, H, 3 * hd), lambda b, h: (h, 0, 0)),   # fused per-head QKV weight
                pl.BlockSpec((1, hd, H), lambda b, h: (h, 0, 0)),       # per-head o_proj weight
            ],
            out_specs=[
                pl.BlockSpec((1, S, H), lambda b, h: (b, 0, 0)),        # accumulated over h
                pl.BlockSpec((1, 1, S, S), lambda b, h: (b, h, 0, 0)),  # attn weights per head
            ],
        ),
        compiler_params=pltpu.CompilerParams(
            dimension_semantics=("parallel", "arbitrary"),
            vmem_limit_bytes=48 * 1024 * 1024,
        ),
    )(x, wqkv, wo_h)


def llama_attention_ref(x, wq, wk, wv, wo, *, num_heads):
    """Pure-JAX f32 reference mirroring the torch forward."""
    B, S, H = x.shape
    hd = H // num_heads
    q = (x @ wq).reshape(B, S, num_heads, hd).transpose(0, 2, 1, 3)
    k = (x @ wk).reshape(B, S, num_heads, hd).transpose(0, 2, 1, 3)
    v = (x @ wv).reshape(B, S, num_heads, hd).transpose(0, 2, 1, 3)
    scores = jnp.einsum("bhqd,bhkd->bhqk", q, k) / math.sqrt(hd)
    w = jax.nn.softmax(scores, axis=-1)
    ctx = jnp.einsum("bhqk,bhkd->bhqd", w, v)
    ctx = ctx.transpose(0, 2, 1, 3).reshape(B, S, H)
    return ctx @ wo, w


if __name__ == "__main__":
    # Small config consistent with the module: hidden=32, heads=4 -> head_dim=8
    batch, seq, hidden, num_heads = 2, 8, 32, 4

    key = jax.random.PRNGKey(0)
    kx, kq, kk, kv, ko = jax.random.split(key, 5)

    x = jax.random.normal(kx, (batch, seq, hidden), dtype=jnp.float32)
    # nn.Linear(hidden, hidden, bias=False) weights, stored pre-transposed (in, out)
    wscale = 1.0 / math.sqrt(hidden)
    wq = jax.random.normal(kq, (hidden, hidden), dtype=jnp.float32) * wscale
    wk = jax.random.normal(kk, (hidden, hidden), dtype=jnp.float32) * wscale
    wv = jax.random.normal(kv, (hidden, hidden), dtype=jnp.float32) * wscale
    wo = jax.random.normal(ko, (hidden, hidden), dtype=jnp.float32) * wscale

    out, attn_w = llama_attention(x, wq, wk, wv, wo, num_heads=num_heads)
    out = jax.block_until_ready(out)
    attn_w = jax.block_until_ready(attn_w)

    out_ref, attn_ref = llama_attention_ref(x, wq, wk, wv, wo, num_heads=num_heads)
    assert out.shape == (batch, seq, hidden)
    assert attn_w.shape == (batch, num_heads, seq, seq)
    # bf16 MXU inputs + approx reciprocal => compare against the f32 reference
    # with bf16-level tolerances.
    assert jnp.allclose(attn_w, attn_ref, atol=2e-2, rtol=2e-2), (
        float(jnp.max(jnp.abs(attn_w - attn_ref))))
    assert jnp.allclose(out, out_ref, atol=5e-2, rtol=5e-2), (
        float(jnp.max(jnp.abs(out - out_ref))))

    print("KERNEL_OK")
</pallas_src>

<mosaic_0001>
module attributes {stable_mosaic.version = 11 : i64} {
  func.func @llama_attention_kernel(%arg0: i32, %arg1: i32, %arg2: memref<1x8x32xbf16, #tpu.memory_space<vmem>>, %arg3: memref<1x32x24xbf16, #tpu.memory_space<vmem>>, %arg4: memref<1x8x32xbf16, #tpu.memory_space<vmem>>, %arg5: memref<1x8x32xf32, #tpu.memory_space<vmem>>, %arg6: memref<1x1x8x8xf32, #tpu.memory_space<vmem>>) attributes {dimension_semantics = [#tpu.dimension_semantics<parallel>, #tpu.dimension_semantics<arbitrary>], iteration_bounds = array<i64: 2, 4>, scalar_prefetch = 0 : i64, scratch_operands = 0 : i64, tpu.core_type = #tpu.core_type<tc>, window_params = [{transform_indices = @transform_0, window_bounds = array<i64: 1, 8, 32>}, {transform_indices = @transform_1, window_bounds = array<i64: 1, 32, 24>}, {transform_indices = @transform_2, window_bounds = array<i64: 1, 8, 32>}, {transform_indices = @transform_3, window_bounds = array<i64: 1, 8, 32>}, {transform_indices = @transform_4, window_bounds = array<i64: 1, 1, 8, 8>}]} {
    %c0 = arith.constant 0 : index
    %c0_0 = arith.constant 0 : index
    %c0_1 = arith.constant 0 : index
    %0 = vector.load %arg2[%c0, %c0_0, %c0_1] : memref<1x8x32xbf16, #tpu.memory_space<vmem>>, vector<1x8x32xbf16>
    %1 = vector.shape_cast %0 : vector<1x8x32xbf16> to vector<8x32xbf16>
    %c0_2 = arith.constant 0 : index
    %c0_3 = arith.constant 0 : index
    %c0_4 = arith.constant 0 : index
    %2 = vector.load %arg3[%c0_2, %c0_3, %c0_4] : memref<1x32x24xbf16, #tpu.memory_space<vmem>>, vector<1x32x24xbf16>
    %3 = vector.shape_cast %2 : vector<1x32x24xbf16> to vector<32x24xbf16>
    %c0_5 = arith.constant 0 : index
    %c0_6 = arith.constant 0 : index
    %c0_7 = arith.constant 0 : index
    %4 = vector.load %arg4[%c0_5, %c0_6, %c0_7] : memref<1x8x32xbf16, #tpu.memory_space<vmem>>, vector<1x8x32xbf16>
    %5 = vector.shape_cast %4 : vector<1x8x32xbf16> to vector<8x32xbf16>
    %cst = arith.constant dense<0.000000e+00> : vector<8x24xf32>
    %6 = tpu.matmul %1, %3, %cst {dimension_numbers = #tpu.dot_dimension_numbers<[1], [0], [0], [1], [0, 0, 1, 1], [], []>} : vector<8x32xbf16>, vector<32x24xbf16>, vector<8x24xf32> -> vector<8x24xf32>
    %7 = vector.extract_strided_slice %6 {offsets = [0, 0], sizes = [8, 8], strides = [1, 1]} : vector<8x24xf32> to vector<8x8xf32>
    %cst_8 = arith.constant 0.353553385 : f32
    %8 = vector.broadcast %cst_8 : f32 to vector<8x8xf32>
    %9 = arith.mulf %7, %8 : vector<8x8xf32>
    %10 = arith.truncf %9 : vector<8x8xf32> to vector<8x8xbf16>
    %11 = vector.extract_strided_slice %6 {offsets = [0, 8], sizes = [8, 8], strides = [1, 1]} : vector<8x24xf32> to vector<8x8xf32>
    %12 = arith.truncf %11 : vector<8x8xf32> to vector<8x8xbf16>
    %13 = vector.extract_strided_slice %6 {offsets = [0, 16], sizes = [8, 8], strides = [1, 1]} : vector<8x24xf32> to vector<8x8xf32>
    %14 = arith.truncf %13 : vector<8x8xf32> to vector<8x8xbf16>
    %cst_9 = arith.constant dense<0.000000e+00> : vector<8x8xf32>
    %15 = tpu.matmul %10, %12, %cst_9 {dimension_numbers = #tpu.dot_dimension_numbers<[1], [1], [0], [0], [0, 0, 1, 0], [], []>} : vector<8x8xbf16>, vector<8x8xbf16>, vector<8x8xf32> -> vector<8x8xf32>
    %cst_10 = arith.constant dense<0xFF800000> : vector<8xf32>
    %16 = vector.multi_reduction <maximumf>, %15, %cst_10 [1] : vector<8x8xf32> to vector<8xf32>
    %17 = vector.shape_cast %16 : vector<8xf32> to vector<8x1xf32>
    %18 = vector.broadcast %17 : vector<8x1xf32> to vector<8x8xf32>
    %19 = arith.subf %15, %18 : vector<8x8xf32>
    %20 = math.exp %19 : vector<8x8xf32>
    %cst_11 = arith.constant dense<0.000000e+00> : vector<8xf32>
    %21 = vector.multi_reduction <add>, %20, %cst_11 [1] : vector<8x8xf32> to vector<8xf32>
    %22 = vector.shape_cast %21 : vector<8xf32> to vector<8x1xf32>
    %23 = tpu.reciprocal %22 {approx = true} : vector<8x1xf32> -> vector<8x1xf32>
    %24 = vector.broadcast %23 : vector<8x1xf32> to vector<8x8xf32>
    %25 = arith.mulf %20, %24 : vector<8x8xf32>
    %c0_12 = arith.constant 0 : index
    %c0_13 = arith.constant 0 : index
    %c0_14 = arith.constant 0 : index
    %c0_15 = arith.constant 0 : index
    %26 = vector.load %arg6[%c0_12, %c0_13, %c0_14, %c0_15] : memref<1x1x8x8xf32, #tpu.memory_space<vmem>>, vector<1x1x8x8xf32>
    %27 = vector.shape_cast %26 : vector<1x1x8x8xf32> to vector<8x8xf32>
    %28 = vector.shape_cast %25 : vector<8x8xf32> to vector<1x1x8x8xf32>
    tpu.vector_store %arg6[%c0_12, %c0_13, %c0_14, %c0_15], %28 {strides = array<i32>} : memref<1x1x8x8xf32, #tpu.memory_space<vmem>>, vector<1x1x8x8xf32>,
    %29 = arith.truncf %25 : vector<8x8xf32> to vector<8x8xbf16>
    %cst_16 = arith.constant dense<0.000000e+00> : vector<8x8xf32>
    %30 = tpu.matmul %29, %14, %cst_16 {dimension_numbers = #tpu.dot_dimension_numbers<[1], [0], [0], [1], [0, 0, 1, 1], [], []>} : vector<8x8xbf16>, vector<8x8xbf16>, vector<8x8xf32> -> vector<8x8xf32>
    %31 = arith.truncf %30 : vector<8x8xf32> to vector<8x8xbf16>
    %cst_17 = arith.constant dense<0.000000e+00> : vector<8x32xf32>
    %32 = tpu.matmul %31, %5, %cst_17 {dimension_numbers = #tpu.dot_dimension_numbers<[1], [0], [0], [1], [0, 0, 1, 1], [], []>} : vector<8x8xbf16>, vector<8x32xbf16>, vector<8x32xf32> -> vector<8x32xf32>
    %c0_i32 = arith.constant 0 : i32
    %33 = arith.cmpi eq, %arg1, %c0_i32 : i32
    %34 = arith.extui %33 : i1 to i32
    %c0_i32_18 = arith.constant 0 : i32
    %35 = arith.cmpi ne, %34, %c0_i32_18 : i32
    scf.if %35 {
      %cst_25 = arith.constant 0.000000e+00 : f32
      %42 = vector.broadcast %cst_25 : f32 to vector<1x8x32xf32>
      %c0_26 = arith.constant 0 : index
      %c0_27 = arith.constant 0 : index
      %c0_28 = arith.constant 0 : index
      %43 = vector.load %arg5[%c0_26, %c0_27, %c0_28] : memref<1x8x32xf32, #tpu.memory_space<vmem>>, vector<1x8x32xf32>
      tpu.vector_store %arg5[%c0_26, %c0_27, %c0_28], %42 {strides = array<i32>} : memref<1x8x32xf32, #tpu.memory_space<vmem>>, vector<1x8x32xf32>,
    } else {
    }
    %c0_19 = arith.constant 0 : index
    %c0_20 = arith.constant 0 : index
    %c0_21 = arith.constant 0 : index
    %36 = vector.load %arg5[%c0_19, %c0_20, %c0_21] : memref<1x8x32xf32, #tpu.memory_space<vmem>>, vector<1x8x32xf32>
    %37 = vector.shape_cast %36 : vector<1x8x32xf32> to vector<8x32xf32>
    %38 = arith.addf %37, %32 : vector<8x32xf32>
    %c0_22 = arith.constant 0 : index
    %c0_23 = arith.constant 0 : index
    %c0_24 = arith.constant 0 : index
    %39 = vector.load %arg5[%c0_22, %c0_23, %c0_24] : memref<1x8x32xf32, #tpu.memory_space<vmem>>, vector<1x8x32xf32>
    %40 = vector.shape_cast %39 : vector<1x8x32xf32> to vector<8x32xf32>
    %41 = vector.shape_cast %38 : vector<8x32xf32> to vector<1x8x32xf32>
    tpu.vector_store %arg5[%c0_22, %c0_23, %c0_24], %41 {strides = array<i32>} : memref<1x8x32xf32, #tpu.memory_space<vmem>>, vector<1x8x32xf32>,
    return
  }
  func.func @transform_0(%arg0: i32, %arg1: i32) -> (i32, i32, i32) {
    %c0_i32 = arith.constant 0 : i32
    %c0_i32_0 = arith.constant 0 : i32
    %c0_i32_1 = arith.constant 0 : i32
    return %arg0, %c0_i32, %c0_i32_0 : i32, i32, i32
  }
  func.func @transform_1(%arg0: i32, %arg1: i32) -> (i32, i32, i32) {
    %c0_i32 = arith.constant 0 : i32
    %c0_i32_0 = arith.constant 0 : i32
    %c0_i32_1 = arith.constant 0 : i32
    return %arg1, %c0_i32, %c0_i32_0 : i32, i32, i32
  }
  func.func @transform_2(%arg0: i32, %arg1: i32) -> (i32, i32, i32) {
    %c0_i32 = arith.constant 0 : i32
    %c0_i32_0 = arith.constant 0 : i32
    %c0_i32_1 = arith.constant 0 : i32
    return %arg1, %c0_i32, %c0_i32_0 : i32, i32, i32
  }
  func.func @transform_3(%arg0: i32, %arg1: i32) -> (i32, i32, i32) {
    %c0_i32 = arith.constant 0 : i32
    %c0_i32_0 = arith.constant 0 : i32
    %c0_i32_1 = arith.constant 0 : i32
    return %arg0, %c0_i32, %c0_i32_0 : i32, i32, i32
  }
  func.func @transform_4(%arg0: i32, %arg1: i32) -> (i32, i32, i32, i32) {
    %c0_i32 = arith.constant 0 : i32
    %c0_i32_0 = arith.constant 0 : i32
    %c0_i32_1 = arith.constant 0 : i32
    return %arg0, %arg1, %c0_i32, %c0_i32_0 : i32, i32, i32, i32
  }
}

</mosaic_0001>

<bundles_post_ra>
// kernel: tpu_custom_call.1
= control target key start
LH: loop header
LB: loop body
LE: loop exit
PB: predicated region body
PF: predicated region fallthrough
CT: control target
= control target key end

     0   :  { %s1253_s0 = inlined_call_operand.vmem [shape: bf16[2,8,32], index: 0, kind: input, shape index: {}]   ;;  %s1254_s1 = inlined_call_operand.vmem [shape: bf16[4,32,24], index: 1, kind: input, shape index: {}]   ;;  %s1255_s2 = inlined_call_operand.vmem [shape: bf16[4,8,32], index: 2, kind: input, shape index: {}]   ;;  %s1256_s3 = inlined_call_operand.hbm [shape: f32[2,8,32], index: 3, kind: output, shape index: {0}]   ;;  %s1257_s4 = inlined_call_operand.hbm [shape: f32[2,4,8,8], index: 4, kind: output, shape index: {1}]  }
   0x1   :  { %1264 = sst [smem:[#allocation12_spill]] %s1253_s0 }
   0x2   :  { %1265 = sst [smem:[#allocation13_spill]] %s1254_s1 }
   0x3   :  { %1266 = sst [smem:[#allocation14_spill]] %s1255_s2 }
   0x4   :  { %10 = vsyncpa [#allocation3], 0 }
   0x5   :  { %12 = vsyncpa [#allocation3 + $0x1], 0 }
   0x6   :  { %13 = vsyncpa [#allocation5], 0 }
   0x7   :  { %15 = vsyncpa [#allocation5 + $0x1], 0  ;;  %s1002_s15 = smov 0   ;;  %s1004_s16 = smov 0  }
   0x8   :  { %s1006_s17 = smov 0   ;;  %s1008_s18 = smov 0  }
   0x9   :  { %s1010_s19 = smov 0   ;;  %s1012_s20 = smov 0  }
   0xa   :  { %s1014_s21 = smov 0   ;;  %s1016_s22 = smov 0  }
   0xb   :  { %s1018_s23 = smov 0   ;;  %s1020_s24 = smov 0  }
   0xc   :  { %s1022_s25 = smov 0  }
   0xd LB: > { %1267 = sst [smem:[#allocation8_spill]] %s960_s23  ;;  %s650_s26 = sadd.s32 4294967295, %s968_s25   ;;  %s968_s25 = sphi %s1022_s25, %s21_s25   ;;  %s964_s24 = sphi %s1020_s24, %s1286_s24   ;;  %s960_s23 = sphi %s1018_s23, %s1285_s23   ;;  %s956_s22 = sphi %s1016_s22, %s1284_s22   ;;  %s952_s21 = sphi %s1014_s21, %s1283_s21   ;;  %s948_s20 = sphi %s1012_s20, %s1292_s20   ;;  %s944_s19 = sphi %s1010_s19, %s1291_s19   ;;  %s940_s18 = sphi %s1008_s18, %s1290_s18   ;;  %s936_s17 = sphi %s1006_s17, %s1289_s17   ;;  %s932_s16 = sphi %s1004_s16, %s1288_s16   ;;  %s928_s15 = sphi %s1002_s15, %s1287_s15  }
   0xe   : > { %1268 = sst [smem:[#allocation9_spill]] %s964_s24  ;;  %s651_s27 = sadd.s32 4294967294, %s968_s25  }
   0xf   : > { %s30_s28 = sadd.s32 1, %s960_s23  ;;  %s33_s29 = sadd.s32 1, %s964_s24 }
  0x10   : > { %p31_p0 = scmp.ge.s32.totalorder %s30_s28, 4  ;;  %s118_s30 = sadd.s32 1, %s948_s20 }
  0x11   : > { %p128_p1 = scmp.ne.s32.totalorder %s948_s20, %s944_s19  ;;  %p1064_p2 = scmp.eq.s32.totalorder %s650_s26, 7 }
  0x12   : > { %s1294_s28 = smov (%p31_p0, %s30_s28), 0  ;;  %s1296_s29 = smov (!%p31_p0, %s33_s29), %s964_s24 }
  0x13   : > { %1270 = sst [smem:[#allocation10_spill]] %s1294_s28  ;;  %p1073_p3 = por %p1064_p2, %p128_p1 }
  0x14   : > { %p134_p4 = scmp.ne.s32.totalorder %s944_s19, %s940_s18  ;;  %p35_p5 = scmp.ge.s32.totalorder %s1296_s29, 2 }
  0x15   : > { %p1079_p6 = scmp.eq.s32.totalorder %s651_s27, 7  ;;  %s142_s8 = ssub.s32 %s960_s23, %s1294_s28 }
  0x16   : > { %s146_s9 = sadd.s32 1, %s936_s17  ;;  %s1298_s29 = smov (%p35_p5, %s1296_s29), 0 }
  0x17   : > { %1273 = sst [smem:[#allocation11_spill]] %s1298_s29  ;;  %p1090_p7 = por %p1079_p6, %p134_p4 }
  0x18   : > { %p156_p8 = scmp.ne.s32.totalorder %s936_s17, %s932_s16  ;;  %s115_s11 = ssub.s32 %s964_s24, %s1298_s29 }
  0x19   : > { %p162_p9 = scmp.ne.s32.totalorder %s932_s16, %s928_s15  ;;  %p116_p10 = scmp.eq.s32.totalorder %s115_s11, 0 }
  0x1a   : > { %s143_s12 = sor.u32 %s142_s8, %s115_s11  ;;  %p1102_p12 = por %p156_p8, %p1064_p2 }
  0x1b   : > { %p144_p11 = scmp.eq.s32.totalorder %s143_s12, 0  ;;  %p1114_p13 = por %p162_p9, %p1079_p6 }
  0x1c   : > { %s1107_s14 = scalar_select %p116_p10, %s948_s20, %s118_s30  }
  0x1d   : > { %s1110_s26 = scalar_select %p144_p11, %s936_s17, %s146_s9  }
  0x1e   : > { %s1276_s27 = scalar_select %p1114_p13, 1, 0 }
  0x1f   : > { %p654_p0 = scmp.ge.s32.totalorder %s968_s25, 1  ;;  %p203_p1 = scmp.lt.s32.totalorder %s968_s25, 9 }
  0x21   : > { %p204_p4 = pnand %p654_p0, %p203_p1 }
  0x22   : > { %s1259_s5 = sand.u32 (!%p204_p4), 1, %s944_s19   ;;  %p246_p2 = scmp.lt.s32.totalorder (!%p204_p4), %s952_s21, 3 }
  0x23   : > { %207 = sbr.rel (%p204_p4) target bundleno = 1322 (0x52a), region = 32  ;;  %s1124_s30 = sshll.u32 (!%p204_p4), %s1259_s5, 3 }
  0x24   : > { %p242_p5 = scmp.lt.s32.totalorder (!%p204_p4), %s956_s22, 1  ;;  %s1277_s1 = sld [smem:[#allocation13_spill]] (!%p204_p4) }
  0x25   : > { %s1278_s0 = sld [smem:[#allocation12_spill]] (!%p204_p4)  ;;  %s234_s12 = scalar_lea.vmem (!%p204_p4), [#allocation2], %s1124_s30 }
  0x26   : > { %s1279_s2 = sld [smem:[#allocation14_spill]] (!%p204_p4)  ;;  %p667_p6 = scmp.ne.s32.totalorder (!%p204_p4), %s952_s21, 0 }
  0x28   : > { %v970_v0 = vmov 0.0   ;;  %vm971_vm0 = vmmov 0   ;;  %s1130_s7 = scalar_select %p246_p2, %s952_s21, 3  ;;  %vm274_vm1 = vcmask 261120   ;;  %vm324_vm2 = vcmask 64512  }
  0x29   : > { %685 = vmatprep.subr.bf16.mxu0 %v970_v0  ;;  %689 = vmatprep.mubr.msk.bf16.mxu0 %vm971_vm0, %v970_v0  ;;  %s243_s8 = scalar_select %p242_p5, %s956_s22, 1  ;;  %vm389_vm3 = vcmask 1043456  }
  0x2a   : > { %693 = vmatprep.subr.bf16.mxu1 %v970_v0  ;;  %695 = vmatprep.mubr.msk.bf16.mxu1 %vm971_vm0, %v970_v0  ;;  %s675_s9 = sshll.u32 %s1130_s7, 4 }
  0x2b   : > { %s250_s29 = scalar_lea.vmem %s1277_s1, %s675_s9  ;;  %s657_s5 = sshll.u32 %s243_s8, 2 }
  0x2c   : > { %v816_v1 = vld [vmem:[%s250_s29 + $0x8] sm:$0xff]   ;;  %v817_v2 = vld [vmem:[%s250_s29] sm:$0xff]   ;;  %s245_s23 = scalar_lea.vmem %s1278_s0, %s657_s5  ;;  %s972_s9 = smov 120  }
  0x2d   : > { %686 = vmatpush3.bf16.msra.mxu0 %v816_v1  ;;  %v256_v3 = vld [vmem:[%s245_s23] sm:$0xf]  ;;  %s660_s23 = sshll.u32 %s1130_s7, 2  ;;  %s973_s5 = smov 112  }
  0x2e   : > { %687 = vmatprep.subr.bf16.mxu0 %v970_v0  ;;  %s254_s29 = scalar_lea.vmem %s1279_s2, %s660_s23  ;;  %s1263_s8 = sand.u32 1, %s932_s16  }
  0x2f   : > { %v261_v23 = vld [vmem:[%s254_s29] sm:$0xf]  ;;  %s1154_s11 = sshll.u32 %s1263_s8, 3 }
  0x30   : > { %v438_v24 = vsel %vm389_vm3, %v261_v23, 0  ;;  %s241_s7 = scalar_lea.vmem [#allocation4], %s1154_s11 }
  0x31   : > { %688 = vmatpush3.bf16.msra.mxu0 %v817_v2 }
  0x32   : > { %699 = vmatprep.subr.bf16.mxu0 %v970_v0 }
  0x34   : > { %690 = vmatmul.mubr.msk.bf16.vlgmr.msra.gmra.mxu0 %vm274_vm1, %v256_v3 }
  0x35   : > { %701 = vmatprep.mubr.msk.bf16.mxu0 %vm971_vm0, %v970_v0 }
  0xf4   : > { %v312_v4 = vpop.f32.mrf.mxu0 }
  0xf5   : > { %v320_v5 = vpack.c.bf16 %v312_v4, %v312_v4  ;;  %v318_v11 = vmul.f32 0.35355338, %v312_v4 }
  0xf6   : > { %v691_v6 = vpop.f32.mrf.mxu0 }
  0xf7   : > { %322 = vrot.lane.b32.xlu0 %v320_v5, %s972_s9  ;;  %v319_v12 = vpack.c.bf16 %v318_v11, %v318_v11 }
  0xf8   : > { %v315_v7 = vpop.f32.mrf.mxu0 }
  0xfa   : > { %v692_v8 = vpop.f32.mrf.mxu0 }
 0x169   : > { %v323_v9 = vpop.permute.xlu0 %322 }
 0x16a   : > { %v329_v10 = vsel %vm324_vm2, %v323_v9, 0 }
 0x16b   : > { %694 = vmatpush3.bf16.xpose.msra.mxu1 %v329_v10 }
 0x16c   : > { %705 = vmatprep.subr.bf16.mxu1 %v970_v0 }
 0x172   : > { %696 = vmatmul.mubr.msk.bf16.vlgmr.msra.gmra.mxu1 %vm324_vm2, %v319_v12 }
 0x173   : > { %707 = vmatprep.mubr.msk.bf16.mxu1 %vm971_vm0, %v970_v0  ;;  %706 = vmatpush3.bf16.msra.mxu1 %v438_v24 }
 0x232   : > { %v365_v13 = vpop.f32.mrf.mxu1 }
 0x233   : > { %v371_v14 = vsel %vm324_vm2, %v365_v13, -inf }
 0x234   : > { %372 = vmax.xlane.f32.xlu0 %v371_v14  ;;  %v697_v15 = vpop.f32.mrf.mxu1 }
 0x236   : > { %v368_v16 = vpop.f32.mrf.mxu1 }
 0x238   : > { %v698_v17 = vpop.f32.mrf.mxu1 }
 0x2bd   : > { %v373_v18 = vpop.xlane.xlu0 %372 }
 0x2be   : > { %v374_v19 = vsub.f32 %v365_v13, %v373_v18 }
 0x2c0   : > { %v375_v20 = vmul.f32 1.442695, %v374_v19 }
 0x2c2   : > { %818 = vpow2.f32 %v375_v20 }
 0x2cf   : > { %v819_v21 = vpop.eup %818 }
 0x2d0   : > { %v377_v22 = vsel %vm324_vm2, %v819_v21, 0.0 }
 0x2d1   : > { %378 = vadd.xlane.f32.xlu1 %v377_v22 }
 0x2e2   : > { %384 = vrot.lane.b32.xlu1 %v320_v5, %s973_s5 }
 0x35a   : > { %v379_v25 = vpop.xlane.xlu1 %378 }
 0x35b   : > { %820 = vrcp.f32 %v379_v25 }
 0x35e   : > { %v385_v26 = vpop.permute.xlu1 %384 }
 0x35f   : > { %v391_v27 = vsel %vm389_vm3, %v385_v26, 0 }
 0x360   : > { %700 = vmatpush3.bf16.msra.mxu0 %v391_v27 }
 0x368   : > { %v821_v28 = vpop.eup %820 }
 0x369   : > { %v381_v29 = vmul.f32 %v821_v28, %v819_v21 }
 0x36b   : > { %382 = vst.msk [vmem:[%s241_s7] sm:$0xff] %vm324_vm2, %v381_v29  ;;  %v383_v30 = vpack.c.bf16 %v381_v29, %v381_v29 }
 0x36d   : > { %702 = vmatmul.mubr.msk.bf16.vlgmr.msra.gmra.mxu0 %vm324_vm2, %v383_v30 }
 0x42d   : > { %v427_v31 = vpop.f32.mrf.mxu0 }
 0x42e   : > { %v433_v32 = vpack.c.bf16 %v427_v31, %v427_v31 }
 0x42f   : > { %v703_v33 = vpop.f32.mrf.mxu0 }
 0x430   : > { %708 = vmatmul.mubr.msk.bf16.vlgmr.msra.gmra.mxu1 %vm324_vm2, %v433_v32 }
 0x431   : > { %v430_v34 = vpop.f32.mrf.mxu0 }
 0x433   : > { %v704_v35 = vpop.f32.mrf.mxu0 }
 0x4f0   : > { %v474_v36 = vpop.f32.mrf.mxu1 }
 0x4f2   : > { %v709_v37 = vpop.f32.mrf.mxu1  ;;  %483 = sbr.rel (%p667_p6) target bundleno = 1273 (0x4f9), region = 36 }
 0x4f4   : > { %v477_v38 = vpop.f32.mrf.mxu1 }
 0x4f6   : > { %v710_v39 = vpop.f32.mrf.mxu1 }
 0x4f7   : > { %v974_v40 = vmov 0.0  }
 0x4f8   : > { %484 = vst.msk [vmem:[%s234_s12] sm:$0xff] %vm274_vm1, %v974_v40 }
 0x4f9 PF: > { %s670_s9 = sshll.u32 %s956_s22, 7  ;;  %s507_s30 = sshll.u32 %s234_s12, 4  ;;  %s1169_s30 = int_to_ptr.vmem [resolvable:$true] %s507_s30 }
 0x4fa   : > { %s1167_s28 = scalar_lea.hbm %s1256_s3, %s670_s9  ;;  %s671_s29 = sshll.u32 %s956_s22, 2 }
 0x4fb   : > { %s522_s5 = sshll.u32 %s241_s7, 4  ;;  %s1280_s11 = sand.u32 1, %s944_s19   ;;  %s523_s5 = int_to_ptr.vmem [resolvable:$true] %s522_s5 }
 0x4fc   : > { %s489_s8 = scalar_lea.sflag [#allocation3], %s1280_s11  ;;  %s822_s0 = scalar_lea.vmem %s1169_s30, 128 }
 0x4fd   : > { %p823_p8 = scmp.ne.s32.totalorder %s1169_s30, %s822_s0  ;;  %s975_s23 = smov [#allocation2]  }
 0x4fe   : > { %s826_s9 = sshll.u32 %s975_s23, 4  ;;  %s827_s9 = int_to_ptr.vmem [resolvable:$false] %s826_s9 }
 0x4ff   : > { %v485_v41 = vld [vmem:[%s234_s12] sm:$0xff]  ;;  %p824_p9 = pnand %p823_p8, %p1073_p3  ;;  %s828_s24 = scalar_lea.vmem %s827_s9, 256 }
 0x500   : > { %v486_v42 = vadd.f32 %v485_v41, %v474_v36  ;;  %p829_p11 = scmp.lt.s32.totalorder %s1169_s30, %s827_s9  ;;  %p830_p0 = scmp.lt.s32.totalorder %s828_s24, %s822_s0 }
 0x501   : > { %p825_p10 = pneg %p824_p9 }
 0x502   : > { %487 = vst.msk [vmem:[%s234_s12] sm:$0xff] %vm274_vm1, %v486_v42  ;;  %p831_p1 = por %p830_p0, %p829_p11 }
 0x504   : > { %p832_p4 = pnand %p831_p1, %p825_p10 }
 0x506   : > { %835 = shalt.err (!%p832_p4)
}
 0x507   : > { %s836_s22 = scalar_lea.hbm %s1167_s28, 128  ;;  %s840_s11 = scalar_lea.hbm %s1256_s3, 256 }
 0x508   : > { %p837_p2 = scmp.ne.s32.totalorder %s1167_s28, %s836_s22  ;;  %p841_p8 = scmp.lt.s32.totalorder %s1167_s28, %s1256_s3 }
 0x509   : > { %p842_p9 = scmp.lt.s32.totalorder %s840_s11, %s836_s22 }
 0x50a   : > { %p838_p5 = pnand %p837_p2, %p1073_p3 }
 0x50b   : > { %p843_p10 = por %p842_p9, %p841_p8 }
 0x50c   : > { %p839_p6 = pneg %p838_p5 }
 0x50e   : > { %p844_p11 = pnand %p843_p10, %p839_p6 }
 0x510   : > { %847 = shalt.err (!%p844_p11)
}
 0x511   : > { %711 = dma.vmem_to_hbm [thread:$0]  (%p1073_p3), %s1169_s30, 128, %s1167_s28, %s489_s8  }
 0x512   : > { %s518_s0 = sadd.s32 %s952_s21, %s671_s29  ;;  %s1281_s12 = sand.u32 1, %s932_s16  }
 0x513   : > { %s672_s9 = sshll.u32 %s518_s0, 7  ;;  %s494_s22 = scalar_lea.sflag [#allocation5], %s1281_s12 }
 0x514   : > { %s520_s1 = scalar_lea.hbm %s1257_s4, %s672_s9  ;;  %s848_s11 = scalar_lea.vmem %s523_s5, 128 }
 0x515   : > { %p849_p0 = scmp.ne.s32.totalorder %s523_s5, %s848_s11  ;;  %s976_s6 = smov [#allocation4]  }
 0x516   : > { %s852_s23 = sshll.u32 %s976_s6, 4  ;;  %s853_s23 = int_to_ptr.vmem [resolvable:$false] %s852_s23 }
 0x517   : > { %p850_p1 = pnand %p849_p0, %p1102_p12  ;;  %s854_s2 = scalar_lea.vmem %s853_s23, 256 }
 0x518   : > { %p855_p2 = scmp.lt.s32.totalorder %s523_s5, %s853_s23  ;;  %p856_p3 = scmp.lt.s32.totalorder %s854_s2, %s848_s11 }
 0x519   : > { %p851_p4 = pneg %p850_p1 }
 0x51a   : > { %p857_p5 = por %p856_p3, %p855_p2 }
 0x51c   : > { %p858_p6 = pnand %p857_p5, %p851_p4 }
 0x51e   : > { %861 = shalt.err (!%p858_p6)
}
 0x51f   : > { %s862_s21 = scalar_lea.hbm %s520_s1, 128  ;;  %s866_s30 = scalar_lea.hbm %s1257_s4, 1024 }
 0x520   : > { %p863_p8 = scmp.ne.s32.totalorder %s520_s1, %s862_s21  ;;  %p867_p11 = scmp.lt.s32.totalorder %s520_s1, %s1257_s4 }
 0x521   : > { %p868_p0 = scmp.lt.s32.totalorder %s866_s30, %s862_s21 }
 0x522   : > { %p864_p9 = pnand %p863_p8, %p1102_p12 }
 0x523   : > { %p869_p1 = por %p868_p0, %p867_p11 }
 0x524   : > { %p865_p10 = pneg %p864_p9 }
 0x526   : > { %p870_p13 = pnand %p869_p1, %p865_p10 }
 0x528   : > { %873 = shalt.err (!%p870_p13)
}
 0x529   : > { %712 = dma.vmem_to_hbm [thread:$0]  (%p1102_p12), %s523_s5, 128, %s520_s1, %s494_s22  }
 0x52a PF: > { %p722_p4 = scmp.ge.s32.totalorder %s968_s25, 2  ;;  %s534_s2 = sand.u32 1, %s940_s18  }
 0x52b   : > { %s535_s9 = scalar_lea.sflag [#allocation3], %s534_s2 }
 0x52c   : > { %p716_p2 = pnand %p722_p4, %p1090_p7 }
 0x52e   : > { %p717_p3 = pneg %p716_p2 }
 0x530   : > { %919 = dma.done.wait (%p717_p3), %s535_s9, 128  }
 0x531   : > { %921 = vsyncadd (%p717_p3), %s535_s9, 4294967168  ;;  %s543_s24 = sand.u32 1, %s928_s15   ;;  %p1282_p5 = scmp.ne.s32.totalorder %s1276_s27, 0 }
 0x532   : > { %s544_s13 = scalar_lea.sflag [#allocation5], %s543_s24 }
 0x533   : > { %p719_p13 = pnand %p722_p4, %p1282_p5 }
 0x535   : > { %p720_p6 = pneg %p719_p13 }
 0x537   : > { %923 = dma.done.wait (%p720_p6), %s544_s13, 128  }
 0x538   : > { %925 = vsyncadd (%p720_p6), %s544_s13, 4294967168  ;;  %s21_s25 = sadd.s32 1, %s968_s25   ;;  %s1283_s21 = sld [smem:[#allocation8_spill]] }
 0x539   : > { %p18_p12 = scmp.ge.s32.totalorder %s21_s25, 10   ;;  %s1284_s22 = sld [smem:[#allocation9_spill]] }
 0x53a   : > { %s1285_s23 = sld [smem:[#allocation10_spill]]  ;;  %s1287_s15 = smov %s932_s16 }
 0x53b   : > { %s1286_s24 = sld [smem:[#allocation11_spill]]  ;;  %s1288_s16 = smov %s936_s17 }
 0x53c   : > { %s1289_s17 = smov %s1110_s26  ;;  %s1290_s18 = smov %s944_s19 }
 0x53d   : > { %s1291_s19 = smov %s948_s20  ;;  %s1292_s20 = smov %s1107_s14 }
 0x53e   :  { %20 = sbr.rel (!%p18_p12) target bundleno = 13 (0xd), region = 94 }
 0x543   :  { %549 = vsyncpa [#allocation3], 1 }
 0x544   :  { %551 = vsyncpa [#allocation3 + $0x1], 1 }
 0x545   :  { %552 = vsyncpa [#allocation5], 1 }
 0x546   :  { %554 = vsyncpa [#allocation5 + $0x1], 1 }

</bundles_post_ra>
